<compile_context>
chip_gen: v6e
topology: v6e:2x2x1
jax: 0.10.0
libtpu: 0.0.40
codegen_flags: <defaults>
</compile_context>

<pallas_src>
import functools

import jax
import jax.numpy as jnp
from jax.experimental import pallas as pl
from jax.experimental.pallas import tpu as pltpu


# ---------------------------------------------------------------------------
# Kernels
# ---------------------------------------------------------------------------

def _tile_max_sum(x_ref, lane_chunk):
    """Max (input dtype) and f32 sum over the lane (spatial) axis of a block.

    The lane axis is reduced in static `lane_chunk`-wide slices so every
    intermediate stays small (bounded VMEM temporaries / vreg pressure)
    regardless of the block width. Returns ((tr, 1) max, (tr, 1) f32 sum).
    """
    thw = x_ref.shape[-1]
    starts = list(range(0, thw, lane_chunk))

    def chunk_stats(st):
        w = min(lane_chunk, thw - st)
        c = x_ref[:, st:st + w]                       # static slice
        m = jnp.max(c, axis=-1, keepdims=True)
        s = jnp.sum(c, axis=-1, keepdims=True, dtype=jnp.float32)
        return m, s

    m, s = chunk_stats(starts[0])
    for st in starts[1:]:                             # small static unroll
        cm, cs = chunk_stats(st)
        m = jnp.maximum(m, cm)
        s = s + cs
    return m, s


def _direct_kernel(x_ref, out_ref, *, inv_hw, lane_chunk):
    """Single spatial step: reduce the whole row block in one shot (no scratch)."""
    m, s = _tile_max_sum(x_ref, lane_chunk)
    out_ref[:, 0:1] = m.astype(out_ref.dtype)
    out_ref[:, 1:2] = (s * inv_hw).astype(out_ref.dtype)


def _fold_kernel(x_ref, out_ref, max_acc, sum_acc, *, inv_hw, lane_chunk):
    """Spatial axis split over grid steps: running (tr, 1) max / f32 sum."""
    hw_id = pl.program_id(1)

    m, s = _tile_max_sum(x_ref, lane_chunk)

    @pl.when(hw_id == 0)
    def _init():                       # seed from the first partial (no -inf needed)
        max_acc[...] = m
        sum_acc[...] = s

    @pl.when(hw_id > 0)
    def _accumulate():
        max_acc[...] = jnp.maximum(max_acc[...], m)
        sum_acc[...] = sum_acc[...] + s

    @pl.when(hw_id == pl.num_programs(1) - 1)
    def _finalize():
        out_ref[:, 0:1] = max_acc[...].astype(out_ref.dtype)
        out_ref[:, 1:2] = (sum_acc[...] * inv_hw).astype(out_ref.dtype)


# ---------------------------------------------------------------------------
# Tiling helpers
# ---------------------------------------------------------------------------

def _pick_tile(total, unit, cap):
    """Largest multiple of `unit` that divides `total` and is <= cap (or None)."""
    best = None
    d = unit
    limit = min(total, cap)
    while d <= limit:
        if total % d == 0:
            best = d
        d += unit
    return best


def _row_tile(n_rows, row_unit, cap):
    """Row (N*C) tile: multiple of sublane packing dividing n_rows, <= cap.

    Prefers >= 2 row blocks so the 'parallel' grid axis can be split across
    both TensorCores on 2-TC chips (v7x); harmless on 1-TC chips.
    """
    if n_rows % row_unit != 0:
        return n_rows                   # only the full extent is layout-legal
    cap = max(cap, row_unit)
    half = (n_rows // 2) // row_unit * row_unit
    if half >= row_unit:                # a >=2-way split exists
        cap = min(cap, half)
    t = _pick_tile(n_rows, row_unit, cap)
    return t if t is not None else n_rows


def _vmem_limit_bytes():
    """Per-generation scoped-VMEM limit: ~half of physical, capped at 64 MiB.

    v5e/v6e (128 MiB physical) -> 64 MiB; v7x (64 MiB per TC) -> 32 MiB.
    Falls back to a conservative 32 MiB if the query is unavailable.
    """
    try:
        phys = int(pltpu.get_tpu_info().vmem_capacity_bytes)
    except Exception:
        phys = 64 * 1024 * 1024
    return max(32 * 1024 * 1024, min(phys // 2, 64 * 1024 * 1024))


# ---------------------------------------------------------------------------
# Wrapper
# ---------------------------------------------------------------------------

def adaptive_concat_pool2d(x, *, target_block_bytes=None, lane_chunk=2048):
    """x: (N, C, H, W) NCHW -> (N, 2*C, 1, 1): [max-pool ; avg-pool] along C."""
    N, C, H, W = x.shape
    hw = H * W
    n_rows = N * C
    itemsize = jnp.dtype(x.dtype).itemsize
    x2 = x.reshape(n_rows, hw)

    vmem_limit = _vmem_limit_bytes()
    if target_block_bytes is None:
        # One input block; the pipeline double-buffers it -> ~2x this, well
        # inside the scoped limit on every generation.
        target_block_bytes = min(4 * 1024 * 1024, vmem_limit // 8)

    row_unit = 8 * max(1, 4 // itemsize)            # sublane packing (8 f32, 16 bf16)
    lane_ok = (hw % 128) == 0
    min_tr = row_unit if n_rows % row_unit == 0 else n_rows

    # ---- spatial (lane) tile ------------------------------------------------
    # Prefer full rows (thw == hw): contiguous HBM DMA per row block, single
    # reduction step, direct-reduce kernel. Split HW only when the smallest
    # legal row block would not fit the byte budget (and hw is 128-tileable).
    if not lane_ok:
        thw = hw                                    # full extent is the only legal tile
    elif min_tr * hw * itemsize <= target_block_bytes:
        thw = hw
    else:
        lane_budget = max(128, (target_block_bytes // (min_tr * itemsize)) // 128 * 128)
        thw = _pick_tile(hw, 128, lane_budget) or hw

    fold = thw != hw                                # >1 reduction step needed?

    # ---- row (sublane) tile -------------------------------------------------
    rows_by_bytes = max(
        row_unit, (target_block_bytes // (thw * itemsize)) // row_unit * row_unit)
    # Fold path keeps row blocks small (live-range / vreg headroom across
    # reduction steps); direct path may take wider row blocks.
    row_cap = 64 * max(1, 4 // itemsize) if fold else 256
    tr = _row_tile(n_rows, row_unit, min(row_cap, rows_by_bytes))

    inv_hw = 1.0 / hw
    out_shape = jax.ShapeDtypeStruct((n_rows, 2), x.dtype)
    cost = pl.CostEstimate(
        flops=2 * n_rows * hw,
        transcendentals=0,
        bytes_accessed=n_rows * hw * itemsize + 2 * n_rows * itemsize,
    )

    if fold:
        kernel = functools.partial(_fold_kernel, inv_hw=inv_hw, lane_chunk=lane_chunk)
        pooled = pl.pallas_call(
            kernel,
            out_shape=out_shape,
            grid=(n_rows // tr, hw // thw),          # reduction (spatial) axis last
            in_specs=[pl.BlockSpec((tr, thw), lambda r, h: (r, h))],
            out_specs=pl.BlockSpec((tr, 2), lambda r, h: (r, 0)),
            scratch_shapes=[
                pltpu.VMEM((tr, 1), x.dtype),        # running max
                pltpu.VMEM((tr, 1), jnp.float32),    # running sum (f32)
            ],
            compiler_params=pltpu.CompilerParams(
                dimension_semantics=("parallel", "arbitrary"),
                vmem_limit_bytes=vmem_limit),
            cost_estimate=cost,
        )(x2)
    else:
        kernel = functools.partial(_direct_kernel, inv_hw=inv_hw, lane_chunk=lane_chunk)
        pooled = pl.pallas_call(
            kernel,
            out_shape=out_shape,
            grid=(n_rows // tr,),
            in_specs=[pl.BlockSpec((tr, hw), lambda r: (r, 0))],
            out_specs=pl.BlockSpec((tr, 2), lambda r: (r, 0)),
            compiler_params=pltpu.CompilerParams(
                dimension_semantics=("parallel",),
                vmem_limit_bytes=vmem_limit),
            cost_estimate=cost,
        )(x2)

    # (N*C, 2) -> (N, 2, C) -> (N, 2C, 1, 1): max channels first, then avg.
    pooled = pooled.reshape(N, C, 2).transpose(0, 2, 1)
    return pooled.reshape(N, 2 * C, 1, 1)


def _reference(x):
    mx = jnp.max(x, axis=(2, 3), keepdims=True)
    av = jnp.mean(x, axis=(2, 3), keepdims=True)
    return jnp.concatenate([mx, av], axis=1)


if __name__ == "__main__":
    key = jax.random.PRNGKey(0)
    keys = jax.random.split(key, 8)

    cases = [
        # (key, shape, dtype, tol, kwargs)
        (keys[0], (2, 4, 16, 16), jnp.float32, 1e-5, {}),          # primary shape
        (keys[1], (2, 8, 48, 48), jnp.float32, 1e-5, {}),          # direct path, 2 row blocks
        (keys[2], (4, 64, 16, 16), jnp.float32, 1e-5, {}),         # many rows, parallel split
        (keys[3], (2, 4, 7, 7), jnp.float32, 1e-5, {}),            # hw % 128 != 0 fallback
        (keys[4], (2, 4, 16, 16), jnp.bfloat16, 2e-2, {}),         # low-precision input
        (keys[5], (3, 20, 16, 16), jnp.float32, 1e-5, {}),         # rows not multiple of 8
        (keys[6], (2, 8, 48, 48), jnp.float32, 1e-5,
         dict(target_block_bytes=64 * 1024)),                      # forced fold path (f32)
        (keys[7], (2, 8, 48, 48), jnp.bfloat16, 2e-2,
         dict(target_block_bytes=32 * 1024)),                      # forced fold path (bf16)
    ]
    for k, shape, dtype, tol, kwargs in cases:
        x = jax.random.normal(k, shape, dtype=jnp.float32).astype(dtype)
        out = jax.block_until_ready(adaptive_concat_pool2d(x, **kwargs))
        N, C = shape[0], shape[1]
        assert out.shape == (N, 2 * C, 1, 1), (out.shape, shape)
        ref = _reference(x.astype(jnp.float32))
        assert jnp.allclose(out.astype(jnp.float32), ref, atol=tol, rtol=tol), \
            f"mismatch vs reference for {shape} {dtype} {kwargs}"

    print("KERNEL_OK")
</pallas_src>

<mosaic_0001>
module attributes {stable_mosaic.version = 11 : i64} {
  func.func @_direct_kernel(%arg0: i32, %arg1: memref<8x256xf32, #tpu.memory_space<vmem>>, %arg2: memref<8x2xf32, #tpu.memory_space<vmem>>) attributes {dimension_semantics = [#tpu.dimension_semantics<parallel>], iteration_bounds = array<i64: 1>, scalar_prefetch = 0 : i64, scratch_operands = 0 : i64, tpu.core_type = #tpu.core_type<tc>, window_params = [{transform_indices = @transform_0, window_bounds = array<i64: 8, 256>}, {transform_indices = @transform_1, window_bounds = array<i64: 8, 2>}]} {
    %c0 = arith.constant 0 : index
    %c0_0 = arith.constant 0 : index
    %0 = vector.load %arg1[%c0, %c0_0] : memref<8x256xf32, #tpu.memory_space<vmem>>, vector<8x256xf32>
    %cst = arith.constant dense<0xFF800000> : vector<8xf32>
    %1 = vector.multi_reduction <maximumf>, %0, %cst [1] : vector<8x256xf32> to vector<8xf32>
    %2 = vector.shape_cast %1 : vector<8xf32> to vector<8x1xf32>
    %cst_1 = arith.constant dense<0.000000e+00> : vector<8xf32>
    %3 = vector.multi_reduction <add>, %0, %cst_1 [1] : vector<8x256xf32> to vector<8xf32>
    %4 = vector.shape_cast %3 : vector<8xf32> to vector<8x1xf32>
    %c0_2 = arith.constant 0 : index
    %c0_3 = arith.constant 0 : index
    %5 = vector.load %arg2[%c0_2, %c0_3] : memref<8x2xf32, #tpu.memory_space<vmem>>, vector<8x1xf32>
    tpu.vector_store %arg2[%c0_2, %c0_3], %2 {strides = array<i32>} : memref<8x2xf32, #tpu.memory_space<vmem>>, vector<8x1xf32>,
    %cst_4 = arith.constant 3.906250e-03 : f32
    %6 = vector.broadcast %cst_4 : f32 to vector<8x1xf32>
    %7 = arith.mulf %4, %6 : vector<8x1xf32>
    %c0_5 = arith.constant 0 : index
    %c1 = arith.constant 1 : index
    %8 = vector.load %arg2[%c0_5, %c1] : memref<8x2xf32, #tpu.memory_space<vmem>>, vector<8x1xf32>
    tpu.vector_store %arg2[%c0_5, %c1], %7 {strides = array<i32>} : memref<8x2xf32, #tpu.memory_space<vmem>>, vector<8x1xf32>,
    return
  }
  func.func @transform_0(%arg0: i32) -> (i32, i32) {
    %c0_i32 = arith.constant 0 : i32
    %c0_i32_0 = arith.constant 0 : i32
    return %arg0, %c0_i32 : i32, i32
  }
  func.func @transform_1(%arg0: i32) -> (i32, i32) {
    %c0_i32 = arith.constant 0 : i32
    %c0_i32_0 = arith.constant 0 : i32
    return %arg0, %c0_i32 : i32, i32
  }
}

</mosaic_0001>

<bundles_post_ra>
// kernel: tpu_custom_call.1
= control target key start
LH: loop header
LB: loop body
LE: loop exit
PB: predicated region body
PF: predicated region fallthrough
CT: control target
= control target key end

     0   :  { %6 = vsyncpa [#allocation3], 0  ;;  %s61_s6 = smov [#allocation2]   ;;  %s81_s0 = inlined_call_operand.hbm [shape: f32[8,256], index: 0, kind: input, shape index: {}]   ;;  %s82_s1 = inlined_call_operand.vmem [shape: f32[8,2], index: 1, kind: output, shape index: {}]  }
   0x1   :  { %s13_s7 = sshll.u32 %s61_s6, 4  ;;  %s14_s7 = int_to_ptr.vmem [resolvable:$true] %s13_s7 }
   0x2   :  { %s47_s8 = scalar_lea.vmem %s14_s7, 256  ;;  %p52_p1 = scmp.lt.s32.totalorder %s14_s7, %s14_s7 }
   0x3   :  { %p48_p0 = scmp.ne.s32.totalorder %s14_s7, %s47_s8  ;;  %p53_p2 = scmp.lt.s32.totalorder %s47_s8, %s47_s8 }
   0x5   :  { %p54_p3 = por %p53_p2, %p52_p1 }
   0x7   :  { %p55_p4 = pnand %p54_p3, %p48_p0 }
   0x9   :  { %58 = shalt.err (!%p55_p4)
}
   0xa   :  { %16 = dma.hbm_to_vmem [thread:$0]  %s81_s0, 256, %s14_s7, [#allocation3]  }
   0xb   :  { %59 = dma.done.wait [#allocation3], 256  }
   0xc   :  { %60 = vsyncadd [#allocation3], 4294967040  ;;  %v20_v0 = vld [vmem:[#allocation2] sm:$0xff]  ;;  %v21_v1 = vld [vmem:[#allocation2 + $0x8] sm:$0xff]  ;;  %vm28_vm0 = vcmask 7168   ;;  %vm31_vm1 = vcmask 15368  }
   0xd   :  { %v25_v2 = vadd.f32 %v21_v1, %v20_v0  ;;  %v22_v3 = vmax.f32 %v20_v0, %v21_v1 }
   0xf   :  { %26 = vadd.xlane.f32.xlu0 %v25_v2 }
  0x13   :  { %23 = vmax.xlane.f32.xlu0 %v22_v3 }
  0x98   :  { %v27_v4 = vpop.xlane.xlu0 %26 }
  0x99   :  { %v30_v5 = vmul.f32 0.00390625, %v27_v4 }
  0x9c   :  { %v24_v6 = vpop.xlane.xlu0 %23 }
  0x9d   :  { %29 = vst.msk [vmem:[%s82_s1] sm:$0xff] %vm28_vm0, %v24_v6 }
  0x9e   :  { %32 = vst.msk [vmem:[%s82_s1] sm:$0xff] %vm31_vm1, %v30_v5 }
  0x9f   :  { %37 = vsyncpa [#allocation3], 1 }

</bundles_post_ra>
